<compile_context>
chip_gen: v5e
topology: v5e:2x2
jax: 0.10.0
libtpu: 0.0.40
codegen_flags: <defaults>
</compile_context>

<pallas_src>
import functools

import jax
import jax.numpy as jnp
from jax.experimental import pallas as pl
from jax.experimental.pallas import tpu as pltpu


# Model dims (from the PyTorch module).
D_IN = 16 * 6          # 96
D_H1 = 16 * 24         # 384
D_H2 = 16 * 24 * 2     # 768
D_H3 = 16 * 24         # 384
D_OUT = 30 * 6         # 180

# MXU / lane-friendly padded dims.
D_IN_PAD = 128         # pad contraction dim 96 -> 128
D_OUT_PAD = 256        # lane-dense output 180 -> 256 (sliced back in the wrapper)


def _round_up(x, m):
    return (x + m - 1) // m * m


def mlp_kernel(x_ref, w_ref, b_ref, o_ref):
    # Single collapsed affine layer: bf16 operands on the MXU, f32 accumulation,
    # f32 bias add, bf16 store (lane-dense, unmasked vst).
    acc = jnp.dot(x_ref[...], w_ref[...], preferred_element_type=jnp.float32)
    o_ref[...] = (acc + b_ref[...]).astype(o_ref.dtype)


def _choose_tiling(B, tm):
    """Pick (TM, n_tiles, B_pad): balanced tiles, multiple of 16 rows (bf16
    sublane packing), >= 2 grid steps when there is enough work (v7x megacore)."""
    tm = max(16, _round_up(min(tm, _round_up(B, 16)), 16))
    n_tiles = pl.cdiv(B, tm)
    if n_tiles == 1 and B >= 32:
        n_tiles = 2                       # keep both TensorCores busy on v7x
    TM = _round_up(pl.cdiv(B, n_tiles), 16)
    B_pad = TM * n_tiles
    return TM, n_tiles, B_pad


def predictor_mlp_forward(past, kernel_params, *, tm=4096):
    """past: (B, 16, 6) float32. Returns (B, 6, 30) float32."""
    B = past.shape[0]
    TM, n_tiles, B_pad = _choose_tiling(B, tm)

    # Single cast + single pad (batch pad and K pad 96->128 fused in one op).
    x = past.reshape(B, D_IN).astype(jnp.bfloat16)
    x = jnp.pad(x, ((0, B_pad - B), (0, D_IN_PAD - D_IN)))

    w_eff, b_eff = kernel_params   # (128, 256) bf16, (1, 256) f32

    grid = (n_tiles,)

    in_specs = [
        pl.BlockSpec((TM, D_IN_PAD), lambda i: (i, 0)),        # streamed over batch
        pl.BlockSpec((D_IN_PAD, D_OUT_PAD), lambda i: (0, 0)), # resident (~64 KiB)
        pl.BlockSpec((1, D_OUT_PAD), lambda i: (0, 0)),        # resident bias
    ]
    out_specs = pl.BlockSpec((TM, D_OUT_PAD), lambda i: (i, 0))

    flops = 2 * B_pad * D_IN_PAD * D_OUT_PAD
    bytes_accessed = (B_pad * 2 * (D_IN_PAD + D_OUT_PAD)          # bf16 in/out
                      + 2 * D_IN_PAD * D_OUT_PAD + 4 * D_OUT_PAD)  # weights + bias
    cost = pl.CostEstimate(flops=flops, transcendentals=0,
                           bytes_accessed=bytes_accessed)

    out = pl.pallas_call(
        mlp_kernel,
        out_shape=jax.ShapeDtypeStruct((B_pad, D_OUT_PAD), jnp.bfloat16),
        grid=grid,
        in_specs=in_specs,
        out_specs=out_specs,
        compiler_params=pltpu.CompilerParams(
            dimension_semantics=("parallel",),
            # Safe on v7x (64 MiB/TC) and well above actual use (~6 MiB @ TM=4096).
            vmem_limit_bytes=48 * 1024 * 1024),
        cost_estimate=cost,
    )(x, w_eff, b_eff)

    # Output columns were permuted at prep time into (feat, time) order, so the
    # PyTorch `reshape(B,30,6).permute(0,2,1)` is just a reshape here.
    return out[:B, :D_OUT].astype(jnp.float32).reshape(B, 6, 30)


def init_raw_params(key):
    """f32 weights stored as (in, out) + biases (out,), mimicking nn.Linear
    default init U(-1/sqrt(fan_in), 1/sqrt(fan_in))."""
    dims = [D_IN, D_H1, D_H2, D_H3, D_OUT]
    params = []
    for i in range(4):
        fan_in, fan_out = dims[i], dims[i + 1]
        key, kw, kb = jax.random.split(key, 3)
        bound = 1.0 / jnp.sqrt(jnp.float32(fan_in))
        w = jax.random.uniform(kw, (fan_in, fan_out), jnp.float32, -bound, bound)
        b = jax.random.uniform(kb, (fan_out,), jnp.float32, -bound, bound)
        params.append((w, b))
    return params


def prepare_kernel_params(raw_params):
    """Collapse the activation-free 4-layer chain into one affine map (f32),
    fold the output permute, pad K 96->128 and lanes 180->256, cast to bf16."""
    (w1, b1), (w2, b2), (w3, b3), (w4, b4) = raw_params

    # Exact algebraic collapse (done once, in f32).
    w_eff = w1 @ w2 @ w3 @ w4                                   # (96, 180)
    b_eff = ((b1 @ w2 + b2) @ w3 + b3) @ w4 + b4                # (180,)

    # Fold reshape(B,30,6).permute(0,2,1): output column c = f*30 + t takes the
    # original column t*6 + f.
    c = jnp.arange(D_OUT)
    perm = (c % 30) * 6 + (c // 30)
    w_eff = w_eff[:, perm]
    b_eff = b_eff[perm]

    # Zero-pad contraction dim 96->128 and output lanes 180->256.
    w_eff = jnp.pad(w_eff, ((0, D_IN_PAD - D_IN), (0, D_OUT_PAD - D_OUT)))
    b_eff = jnp.pad(b_eff, (0, D_OUT_PAD - D_OUT))

    return (w_eff.astype(jnp.bfloat16),
            b_eff.astype(jnp.float32).reshape(1, D_OUT_PAD))


def _reference_f32(past, raw_params):
    """Original PyTorch semantics in pure f32."""
    B = past.shape[0]
    h = past.reshape(B, D_IN)
    for (w, b) in raw_params:
        h = h @ w + b
    return jnp.transpose(h.reshape(B, 30, 6), (0, 2, 1))


# TODO(synk): mse_loss (training-only helper) is not part of forward; not ported.


if __name__ == "__main__":
    key = jax.random.PRNGKey(0)
    kp, kx1, kx2 = jax.random.split(key, 3)

    raw_params = init_raw_params(kp)
    kernel_params = prepare_kernel_params(raw_params)

    # Small-shape check (B=2, single grid step).
    B = 2
    past = jax.random.normal(kx1, (B, 16, 6), jnp.float32)
    out = jax.block_until_ready(predictor_mlp_forward(past, kernel_params))
    assert out.shape == (B, 6, 30), out.shape
    ref = _reference_f32(past, raw_params)
    assert jnp.allclose(out, ref, atol=5e-2, rtol=5e-2), (
        float(jnp.max(jnp.abs(out - ref))))

    # Multi-tile check (exercises >=2 grid steps + batch padding path).
    B2 = 40
    past2 = jax.random.normal(kx2, (B2, 16, 6), jnp.float32)
    out2 = jax.block_until_ready(predictor_mlp_forward(past2, kernel_params))
    assert out2.shape == (B2, 6, 30), out2.shape
    ref2 = _reference_f32(past2, raw_params)
    assert jnp.allclose(out2, ref2, atol=5e-2, rtol=5e-2), (
        float(jnp.max(jnp.abs(out2 - ref2))))

    print("KERNEL_OK")
</pallas_src>

<mosaic_0001>
module attributes {stable_mosaic.version = 11 : i64} {
  func.func @mlp_kernel(%arg0: i32, %arg1: memref<16x128xbf16, #tpu.memory_space<vmem>>, %arg2: memref<128x256xbf16, #tpu.memory_space<vmem>>, %arg3: memref<1x256xf32, #tpu.memory_space<vmem>>, %arg4: memref<16x256xbf16, #tpu.memory_space<vmem>>) attributes {dimension_semantics = [#tpu.dimension_semantics<parallel>], iteration_bounds = array<i64: 1>, scalar_prefetch = 0 : i64, scratch_operands = 0 : i64, tpu.core_type = #tpu.core_type<tc>, window_params = [{transform_indices = @transform_0, window_bounds = array<i64: 16, 128>}, {pipeline_mode = #tpu.pipeline_mode<synchronous>, transform_indices = @transform_1, window_bounds = array<i64: 128, 256>}, {pipeline_mode = #tpu.pipeline_mode<synchronous>, transform_indices = @transform_2, window_bounds = array<i64: 1, 256>}, {transform_indices = @transform_3, window_bounds = array<i64: 16, 256>}]} {
    %c0 = arith.constant 0 : index
    %c0_0 = arith.constant 0 : index
    %0 = vector.load %arg1[%c0, %c0_0] : memref<16x128xbf16, #tpu.memory_space<vmem>>, vector<16x128xbf16>
    %c0_1 = arith.constant 0 : index
    %c0_2 = arith.constant 0 : index
    %1 = vector.load %arg2[%c0_1, %c0_2] : memref<128x256xbf16, #tpu.memory_space<vmem>>, vector<128x256xbf16>
    %cst = arith.constant dense<0.000000e+00> : vector<16x256xf32>
    %2 = tpu.matmul %0, %1, %cst {dimension_numbers = #tpu.dot_dimension_numbers<[1], [0], [0], [1], [0, 0, 1, 1], [], []>} : vector<16x128xbf16>, vector<128x256xbf16>, vector<16x256xf32> -> vector<16x256xf32>
    %c0_3 = arith.constant 0 : index
    %c0_4 = arith.constant 0 : index
    %3 = vector.load %arg3[%c0_3, %c0_4] : memref<1x256xf32, #tpu.memory_space<vmem>>, vector<1x256xf32>
    %4 = vector.broadcast %3 : vector<1x256xf32> to vector<16x256xf32>
    %5 = arith.addf %2, %4 : vector<16x256xf32>
    %6 = arith.truncf %5 : vector<16x256xf32> to vector<16x256xbf16>
    %c0_5 = arith.constant 0 : index
    %c0_6 = arith.constant 0 : index
    %7 = vector.load %arg4[%c0_5, %c0_6] : memref<16x256xbf16, #tpu.memory_space<vmem>>, vector<16x256xbf16>
    tpu.vector_store %arg4[%c0_5, %c0_6], %6 {strides = array<i32>} : memref<16x256xbf16, #tpu.memory_space<vmem>>, vector<16x256xbf16>,
    return
  }
  func.func @transform_0(%arg0: i32) -> (i32, i32) {
    %c0_i32 = arith.constant 0 : i32
    %c0_i32_0 = arith.constant 0 : i32
    return %arg0, %c0_i32 : i32, i32
  }
  func.func @transform_1(%arg0: i32) -> (i32, i32) {
    %c0_i32 = arith.constant 0 : i32
    %c0_i32_0 = arith.constant 0 : i32
    %c0_i32_1 = arith.constant 0 : i32
    return %c0_i32, %c0_i32_0 : i32, i32
  }
  func.func @transform_2(%arg0: i32) -> (i32, i32) {
    %c0_i32 = arith.constant 0 : i32
    %c0_i32_0 = arith.constant 0 : i32
    %c0_i32_1 = arith.constant 0 : i32
    return %c0_i32, %c0_i32_0 : i32, i32
  }
  func.func @transform_3(%arg0: i32) -> (i32, i32) {
    %c0_i32 = arith.constant 0 : i32
    %c0_i32_0 = arith.constant 0 : i32
    return %arg0, %c0_i32 : i32, i32
  }
}

</mosaic_0001>

<bundles_post_ra>
// kernel: tpu_custom_call.1
= control target key start
LH: loop header
LB: loop body
LE: loop exit
PB: predicated region body
PF: predicated region fallthrough
CT: control target
= control target key end

     0   :  { %8 = vsyncpa [#allocation3], 0  ;;  %s463_s0 = inlined_call_operand.hbm [shape: bf16[16,128], index: 0, kind: input, shape index: {}]   ;;  %s464_s1 = inlined_call_operand.hbm [shape: bf16[128,256], index: 1, kind: input, shape index: {}]   ;;  %s465_s2 = inlined_call_operand.hbm [shape: f32[1,256], index: 2, kind: input, shape index: {}]   ;;  %s466_s3 = inlined_call_operand.hbm [shape: bf16[16,256], index: 3, kind: output, shape index: {}]  }
   0x1   :  { %9 = vsyncpa [#allocation6], 0  ;;  %s28_s14 = sshll.u32 %s464_s1, 4  ;;  %s29_s14 = int_to_ptr.hbm [resolvable:$true] %s28_s14 }
   0x2   :  { %10 = vsyncpa [#allocation4], 0  ;;  %s417_s15 = smov [#allocation5]   ;;  %s15_s19 = sshll.u32 %s463_s0, 4  ;;  %s16_s19 = int_to_ptr.hbm [resolvable:$true] %s15_s19 }
   0x3   :  { %s30_s16 = sshll.u32 %s417_s15, 4  ;;  %s418_s20 = smov 128   ;;  %s31_s16 = int_to_ptr.vmem [resolvable:$true] %s30_s16 }
   0x4   :  { %s419_s21 = smov 8   ;;  %s420_s22 = smov [#allocation2]  }
   0x5   :  { %36 = dma.hbm_to_vmem [thread:$0]  %s29_s14, 2048, %s31_s16, [#allocation6], %s418_s20, %s418_s20, %s419_s21  }
   0x6   :  { %s17_s23 = sshll.u32 %s420_s22, 4  ;;  %s421_s1 = smov 64   ;;  %s18_s23 = int_to_ptr.vmem [resolvable:$true] %s17_s23 }
   0x7   :  { %s422_s24 = smov 4   ;;  %s42_s27 = sshll.u32 %s465_s2, 4  ;;  %s43_s27 = int_to_ptr.hbm [resolvable:$true] %s42_s27 }
   0x8   :  { %23 = dma.hbm_to_vmem [thread:$0]  %s16_s19, 128, %s18_s23, [#allocation3], %s421_s1, %s421_s1, %s422_s24  }
   0x9   :  { %s423_s28 = smov [#allocation7]  }
   0xa   :  { %s44_s0 = sshll.u32 %s423_s28, 4  ;;  %s45_s0 = int_to_ptr.vmem [resolvable:$true] %s44_s0 }
   0xb   :  { %47 = dma.hbm_to_vmem [thread:$0]  %s43_s27, 32, %s45_s0, [#allocation6]  }
   0xc   :  { %411 = dma.done.wait [#allocation3], 128  }
   0xd   :  { %412 = vsyncadd [#allocation3], 4294967168 }
   0xe   :  { %413 = dma.done.wait [#allocation6], 2080  }
   0xf   :  { %414 = vsyncadd [#allocation6], 4294965216  ;;  %v284_v0 = vld [vmem:[#allocation5 + $0x70] sm:$0xf]  ;;  %v306_v1 = vld [vmem:[#allocation5 + $0x74] sm:$0xf0] }
  0x10   :  { %v305_v2 = vld [vmem:[#allocation5 + $0x74] sm:$0xf]  ;;  %v285_v3 = vor.u32 %v306_v1, %v284_v0  ;;  %v286_v4 = vld [vmem:[#allocation5 + $0x78] sm:$0xf0]  ;;  %v276_v5 = vld [vmem:[#allocation5 + $0x60] sm:$0xf] }
  0x11   :  { %v304_v6 = vld [vmem:[#allocation5 + $0x64] sm:$0xf0]  ;;  %v289_v7 = vor.u32 %v305_v2, %v286_v4  ;;  %v303_v8 = vld [vmem:[#allocation5 + $0x64] sm:$0xf]  ;;  %v278_v9 = vld [vmem:[#allocation5 + $0x68] sm:$0xf0] }
  0x12   :  { %170 = vmatpush.bf16.msra.mxu0 %v285_v3  ;;  %v277_v10 = vor.u32 %v304_v6, %v276_v5  ;;  %v281_v11 = vor.u32 %v303_v8, %v278_v9  ;;  %v268_v12 = vld [vmem:[#allocation5 + $0x50] sm:$0xf]  ;;  %v302_v13 = vld [vmem:[#allocation5 + $0x54] sm:$0xf0]  ;;  %v301_v14 = vld [vmem:[#allocation5 + $0x54] sm:$0xf] }
  0x13   :  { %184 = vmatpush.bf16.msra.mxu1 %v289_v7  ;;  %v270_v15 = vld [vmem:[#allocation5 + $0x58] sm:$0xf0]  ;;  %v269_v16 = vor.u32 %v302_v13, %v268_v12  ;;  %v260_v18 = vld [vmem:[#allocation5 + $0x40] sm:$0xf]  ;;  %v300_v19 = vld [vmem:[#allocation5 + $0x44] sm:$0xf0] }
  0x14   :  { %v273_v17 = vor.u32 %v301_v14, %v270_v15  ;;  %v299_v20 = vld [vmem:[#allocation5 + $0x44] sm:$0xf]  ;;  %v262_v21 = vld [vmem:[#allocation5 + $0x48] sm:$0xf0]  ;;  %v261_v22 = vor.u32 %v300_v19, %v260_v18  ;;  %v252_v24 = vld [vmem:[#allocation5 + $0x30] sm:$0xf] }
  0x15   :  { %v265_v23 = vor.u32 %v299_v20, %v262_v21  ;;  %v298_v25 = vld [vmem:[#allocation5 + $0x34] sm:$0xf0]  ;;  %v297_v26 = vld [vmem:[#allocation5 + $0x34] sm:$0xf]  ;;  %v254_v27 = vld [vmem:[#allocation5 + $0x38] sm:$0xf0] }
  0x16   :  { %171 = vmatpush.bf16.msra.mxu0 %v277_v10  ;;  %v253_v28 = vor.u32 %v298_v25, %v252_v24  ;;  %v257_v29 = vor.u32 %v297_v26, %v254_v27  ;;  %v244_v30 = vld [vmem:[#allocation5 + $0x20] sm:$0xf]  ;;  %v296_v31 = vld [vmem:[#allocation5 + $0x24] sm:$0xf0]  ;;  %v295_v32 = vld [vmem:[#allocation5 + $0x24] sm:$0xf] }
  0x17   :  { %185 = vmatpush.bf16.msra.mxu1 %v281_v11  ;;  %v246_v33 = vld [vmem:[#allocation5 + $0x28] sm:$0xf0]  ;;  %v245_v34 = vor.u32 %v296_v31, %v244_v30  ;;  %v236_v36 = vld [vmem:[#allocation5 + $0x10] sm:$0xf]  ;;  %v294_v37 = vld [vmem:[#allocation5 + $0x14] sm:$0xf0] }
  0x18   :  { %v249_v35 = vor.u32 %v295_v32, %v246_v33  ;;  %v293_v38 = vld [vmem:[#allocation5 + $0x14] sm:$0xf]  ;;  %v238_v39 = vld [vmem:[#allocation5 + $0x18] sm:$0xf0]  ;;  %v237_v40 = vor.u32 %v294_v37, %v236_v36  ;;  %v228_v42 = vld [vmem:[#allocation5] sm:$0xf] }
  0x19   :  { %v241_v41 = vor.u32 %v293_v38, %v238_v39  ;;  %v292_v43 = vld [vmem:[#allocation5 + $0x4] sm:$0xf0]  ;;  %v291_v44 = vld [vmem:[#allocation5 + $0x4] sm:$0xf]  ;;  %v230_v45 = vld [vmem:[#allocation5 + $0x8] sm:$0xf0] }
  0x1a   :  { %172 = vmatpush.bf16.msra.mxu0 %v269_v16  ;;  %v229_v46 = vor.u32 %v292_v43, %v228_v42  ;;  %v233_v47 = vor.u32 %v291_v44, %v230_v45  ;;  %v290_v48 = vld [vmem:[#allocation2] sm:$0xff]  ;;  %v78_v49 = vld [vmem:[#allocation7] sm:$0x3]  ;;  %s424_s2 = smov [#allocation8]   ;;  %s208_s5 = sshll.u32 %s466_s3, 4  ;;  %s209_s5 = int_to_ptr.hbm [resolvable:$true] %s208_s5 }
  0x1b   :  { %186 = vmatpush.bf16.msra.mxu1 %v273_v17  ;;  %v80_v50 = vperm.slane %v78_v49, 0  ;;  %v81_v51 = vperm.slane %v78_v49, 1  ;;  %s206_s29 = sshll.u32 %s424_s2, 4  ;;  %s207_s29 = int_to_ptr.vmem [resolvable:$true] %s206_s29 }
  0x1e   :  { %173 = vmatpush.bf16.msra.mxu0 %v261_v22 }
  0x1f   :  { %187 = vmatpush.bf16.msra.mxu1 %v265_v23 }
  0x22   :  { %174 = vmatpush.bf16.msra.mxu0 %v253_v28 }
  0x23   :  { %188 = vmatpush.bf16.msra.mxu1 %v257_v29 }
  0x26   :  { %175 = vmatpush.bf16.msra.mxu0 %v245_v34 }
  0x27   :  { %189 = vmatpush.bf16.msra.mxu1 %v249_v35 }
  0x2a   :  { %176 = vmatpush.bf16.msra.mxu0 %v237_v40 }
  0x2b   :  { %190 = vmatpush.bf16.msra.mxu1 %v241_v41 }
  0x2e   :  { %177 = vmatpush.bf16.msra.mxu0 %v229_v46 }
  0x2f   :  { %191 = vmatpush.bf16.msra.mxu1 %v233_v47 }
  0x31   :  { %178 = vmatmul.bf16.vlgmr.msra.gmra.mxu0 %v290_v48 }
  0x32   :  { %192 = vmatmul.bf16.vlgmr.msra.gmra.mxu1 %v290_v48 }
  0xae   :  { %v179_v52 = vpop.f32.mrf.mxu0 }
  0xaf   :  { %v180_v53 = vadd.f32 %v179_v52, %v80_v50  ;;  %v193_v54 = vpop.f32.mrf.mxu1 }
  0xb0   :  { %v194_v55 = vadd.f32 %v193_v54, %v81_v51 }
  0xb2   :  { %v198_v56 = vpack.c.bf16 %v194_v55, %v180_v53 }
  0xb4   :  { %200 = vst [vmem:[#allocation8] sm:$0xff] %v198_v56 }
  0xb6   :  { %v181_v57 = vpop.f32.mrf.mxu0 }
  0xb7   :  { %v182_v58 = vadd.f32 %v181_v57, %v80_v50  ;;  %v195_v59 = vpop.f32.mrf.mxu1 }
  0xb8   :  { %v196_v60 = vadd.f32 %v195_v59, %v81_v51 }
  0xba   :  { %v199_v61 = vpack.c.bf16 %v196_v60, %v182_v58 }
  0xbc   :  { %201 = vst [vmem:[#allocation8 + $0x8] sm:$0xff] %v199_v61 }
  0xbd   :  { %214 = dma.vmem_to_hbm [thread:$0]  %s207_s29, 256, %s209_s5, [#allocation4], %s418_s20, %s418_s20, %s419_s21  }
  0xbe   :  { %415 = dma.done.wait [#allocation4], 256  }
  0xbf   :  { %416 = vsyncadd [#allocation4], 4294967040 }
  0xc0   :  { %219 = vsyncpa [#allocation3], 1 }
  0xc1   :  { %220 = vsyncpa [#allocation6], 1 }
  0xc2   :  { %221 = vsyncpa [#allocation4], 1 }

</bundles_post_ra>
